<compile_context>
chip_gen: v7x
topology: tpu7x:2x2x1
jax: 0.10.0
libtpu: 0.0.40
codegen_flags: <defaults>
</compile_context>

<pallas_src>
import jax
import jax.numpy as jnp
from jax.experimental import pallas as pl
from jax.experimental.pallas import tpu as pltpu

NEG_SLOPE = 0.01   # nn.LeakyReLU() default
LANE = 128


def _round_up(n, m):
    return ((n + m - 1) // m) * m


def _sublane(dtype):
    # Packed-tile sublane multiple: 8 for 4-byte, 16 for 2-byte, 32 for 1-byte.
    return {4: 8, 2: 16, 1: 32}[jnp.dtype(dtype).itemsize]


def pack_head_params(weights, biases, *, param_dtype=None):
    """Pack per-head [z_dim, out_i] weights / [out_i] biases ONCE.

    Heads are packed contiguously along the output (lane) dim and only the
    total width is padded to a multiple of 128, so a single lane-dense MXU
    matmul produces all head logits.  Call at parameter-init time, not per
    forward step.
    Returns (wp [z_dim, out_pad], bp [1, out_pad] f32, offsets, widths).
    """
    z_dim = weights[0].shape[0]
    widths = [int(w.shape[1]) for w in weights]
    offsets, off = [], 0
    for wdt in widths:
        offsets.append(off)
        off += wdt
    out_pad = _round_up(max(off, 1), LANE)

    if param_dtype is None:
        param_dtype = weights[0].dtype

    wp = jnp.zeros((z_dim, out_pad), param_dtype)
    bp = jnp.zeros((1, out_pad), jnp.float32)
    for w, b, o, wdt in zip(weights, biases, offsets, widths):
        wp = wp.at[:, o:o + wdt].set(w.astype(param_dtype))
        bp = bp.at[0, o:o + wdt].set(b.astype(jnp.float32))
    return wp, bp, tuple(offsets), tuple(widths)


def _heads_kernel(z_ref, w_ref, b_ref, out_ref):
    # LeakyReLU on the VPU, then ONE lane-dense matmul on the MXU for all
    # heads at once (f32 accumulation), bias add, lane-dense store.
    h = z_ref[...]
    h = jnp.where(h >= 0, h, NEG_SLOPE * h)
    acc = jnp.dot(h.astype(w_ref.dtype), w_ref[...],
                  preferred_element_type=jnp.float32)
    out_ref[...] = (acc + b_ref[...]).astype(out_ref.dtype)


def fused_linear_heads(z, wp, bp, offsets, widths, *, block_b=1024):
    """out_i = LeakyReLU(z) @ W_i + b_i for all heads in ONE pallas_call.

    z: [B, z_dim]; (wp, bp, offsets, widths) from pack_head_params.
    Returns a list of [B, out_i] arrays.
    """
    B, z_dim = z.shape
    out_pad = wp.shape[1]
    dtype = z.dtype
    itemsize = jnp.dtype(dtype).itemsize
    w_itemsize = jnp.dtype(wp.dtype).itemsize

    # ---- batch tiling: pad only to the dtype-aware sublane multiple ----
    sub = _sublane(dtype)
    b_pad = _round_up(B, sub)
    k = b_pad // sub
    max_mult = max(1, block_b // sub)
    target = min(k, max_mult)
    # For batches big enough to amortize the ~0.35us per-step overhead, aim
    # for >=2 tiles so the "parallel" axis shards across v7x's 2 TensorCores.
    if b_pad >= 256 and k >= 2:
        target = min(target, (k + 1) // 2)
    d = target
    while k % d != 0:          # tile size must divide b_pad exactly (no waste)
        d -= 1
    tb = d * sub
    grid_b = b_pad // tb

    zp = z if b_pad == B else jnp.pad(z, ((0, b_pad - B), (0, 0)))

    flops = 2 * b_pad * z_dim * out_pad
    bytes_accessed = (
        b_pad * z_dim * itemsize        # activations in
        + z_dim * out_pad * w_itemsize  # resident weights
        + out_pad * 4                   # resident bias (f32)
        + b_pad * out_pad * itemsize    # output
    )

    # Accurate VMEM budget: double-buffered in/out tiles + resident params
    # (+ 2 MiB headroom for Mosaic scratch), instead of a blanket 64 MiB.
    vmem_bytes = (
        2 * tb * z_dim * itemsize
        + 2 * tb * out_pad * itemsize
        + 2 * z_dim * out_pad * w_itemsize
        + 2 * out_pad * 4
        + 2 * 1024 * 1024
    )
    vmem_limit = min(_round_up(vmem_bytes, 1024), 64 * 1024 * 1024)

    out = pl.pallas_call(
        _heads_kernel,
        out_shape=jax.ShapeDtypeStruct((b_pad, out_pad), dtype),
        grid_spec=pltpu.PrefetchScalarGridSpec(
            num_scalar_prefetch=0,
            grid=(grid_b,),
            in_specs=[
                pl.BlockSpec((tb, z_dim), lambda i: (i, 0)),        # batch-tiled
                pl.BlockSpec((z_dim, out_pad), lambda i: (0, 0)),   # resident weights
                pl.BlockSpec((1, out_pad), lambda i: (0, 0)),       # resident bias
            ],
            out_specs=pl.BlockSpec((tb, out_pad), lambda i: (i, 0)),
        ),
        compiler_params=pltpu.CompilerParams(
            dimension_semantics=("parallel",),   # independent batch tiles
            vmem_limit_bytes=vmem_limit,
        ),
        cost_estimate=pl.CostEstimate(
            flops=flops, transcendentals=0, bytes_accessed=bytes_accessed),
    )(zp, wp, bp)

    # ---- wrapper-side slice back to the real (contiguous) head widths ----
    return [out[:B, o:o + wdt] for o, wdt in zip(offsets, widths)]


def xavier_uniform(key, fan_out, fan_in, dtype=jnp.float32):
    # Matches torch.nn.init.xavier_uniform_ (gain=1): U(-a, a), a = sqrt(6/(fan_in+fan_out))
    a = (6.0 / (fan_in + fan_out)) ** 0.5
    return jax.random.uniform(key, (fan_out, fan_in), dtype, minval=-a, maxval=a)


if __name__ == "__main__":
    # VAE(args): only z_dim, d_dim, y_dim matter for the qd/qy heads.
    batch, z_dim, d_dim, y_dim = 8, 32, 5, 16

    key = jax.random.PRNGKey(0)
    k_z, k_wd, k_wy = jax.random.split(key, 3)

    # z_q as produced by qz(...).rsample() upstream.
    z_q = jax.random.normal(k_z, (batch, z_dim), dtype=jnp.float32)

    # PyTorch Linear weights are [out, in]; transpose for the kernel, biases
    # zeroed as in the module's __init__.
    wd = xavier_uniform(k_wd, d_dim, z_dim).T   # [z_dim, d_dim]
    wy = xavier_uniform(k_wy, y_dim, z_dim).T   # [z_dim, y_dim]
    bd = jnp.zeros((d_dim,), jnp.float32)
    by = jnp.zeros((y_dim,), jnp.float32)

    # Packed ONCE at "parameter init" time (hoisted out of the forward path).
    wp, bp, offs, widths = pack_head_params([wd, wy], [bd, by])
    jax.block_until_ready((wp, bp))

    d_hat, y_hat = fused_linear_heads(z_q, wp, bp, offs, widths)
    jax.block_until_ready((d_hat, y_hat))

    # Reference check (plain JAX, mirrors qd.forward / qy.forward).
    h = jnp.where(z_q >= 0, z_q, NEG_SLOPE * z_q)
    ref_d = h @ wd + bd
    ref_y = h @ wy + by
    assert d_hat.shape == (batch, d_dim)
    assert y_hat.shape == (batch, y_dim)
    assert jnp.allclose(d_hat, ref_d, atol=1e-5, rtol=1e-5)
    assert jnp.allclose(y_hat, ref_y, atol=1e-5, rtol=1e-5)

    print("KERNEL_OK")
</pallas_src>

<mosaic_0001>
module attributes {stable_mosaic.version = 11 : i64} {
  func.func @_heads_kernel(%arg0: i32, %arg1: memref<8x32xf32, #tpu.memory_space<vmem>>, %arg2: memref<32x128xf32, #tpu.memory_space<vmem>>, %arg3: memref<1x128xf32, #tpu.memory_space<vmem>>, %arg4: memref<8x128xf32, #tpu.memory_space<vmem>>) attributes {dimension_semantics = [#tpu.dimension_semantics<parallel>], iteration_bounds = array<i64: 1>, scalar_prefetch = 0 : i64, scratch_operands = 0 : i64, tpu.core_type = #tpu.core_type<tc>, window_params = [{transform_indices = @transform_0, window_bounds = array<i64: 8, 32>}, {pipeline_mode = #tpu.pipeline_mode<synchronous>, transform_indices = @transform_1, window_bounds = array<i64: 32, 128>}, {pipeline_mode = #tpu.pipeline_mode<synchronous>, transform_indices = @transform_2, window_bounds = array<i64: 1, 128>}, {transform_indices = @transform_3, window_bounds = array<i64: 8, 128>}]} {
    %c0 = arith.constant 0 : index
    %c0_0 = arith.constant 0 : index
    %0 = vector.load %arg1[%c0, %c0_0] : memref<8x32xf32, #tpu.memory_space<vmem>>, vector<8x32xf32>
    %cst = arith.constant 0.000000e+00 : f32
    %1 = vector.broadcast %cst : f32 to vector<8x32xf32>
    %2 = arith.cmpf oge, %0, %1 : vector<8x32xf32>
    %cst_1 = arith.constant 0.00999999977 : f32
    %3 = vector.broadcast %cst_1 : f32 to vector<8x32xf32>
    %4 = arith.mulf %3, %0 : vector<8x32xf32>
    %5 = arith.select %2, %0, %4 : vector<8x32xi1>, vector<8x32xf32>
    %c0_2 = arith.constant 0 : index
    %c0_3 = arith.constant 0 : index
    %6 = vector.load %arg2[%c0_2, %c0_3] : memref<32x128xf32, #tpu.memory_space<vmem>>, vector<32x128xf32>
    %cst_4 = arith.constant dense<0.000000e+00> : vector<8x128xf32>
    %7 = tpu.matmul %5, %6, %cst_4 {dimension_numbers = #tpu.dot_dimension_numbers<[1], [0], [0], [1], [0, 0, 1, 1], [], []>} : vector<8x32xf32>, vector<32x128xf32>, vector<8x128xf32> -> vector<8x128xf32>
    %c0_5 = arith.constant 0 : index
    %c0_6 = arith.constant 0 : index
    %8 = vector.load %arg3[%c0_5, %c0_6] : memref<1x128xf32, #tpu.memory_space<vmem>>, vector<1x128xf32>
    %9 = vector.broadcast %8 : vector<1x128xf32> to vector<8x128xf32>
    %10 = arith.addf %7, %9 : vector<8x128xf32>
    %c0_7 = arith.constant 0 : index
    %c0_8 = arith.constant 0 : index
    %11 = vector.load %arg4[%c0_7, %c0_8] : memref<8x128xf32, #tpu.memory_space<vmem>>, vector<8x128xf32>
    tpu.vector_store %arg4[%c0_7, %c0_8], %10 {strides = array<i32>} : memref<8x128xf32, #tpu.memory_space<vmem>>, vector<8x128xf32>,
    return
  }
  func.func @transform_0(%arg0: i32) -> (i32, i32) {
    %c0_i32 = arith.constant 0 : i32
    %c0_i32_0 = arith.constant 0 : i32
    return %arg0, %c0_i32 : i32, i32
  }
  func.func @transform_1(%arg0: i32) -> (i32, i32) {
    %c0_i32 = arith.constant 0 : i32
    %c0_i32_0 = arith.constant 0 : i32
    %c0_i32_1 = arith.constant 0 : i32
    return %c0_i32, %c0_i32_0 : i32, i32
  }
  func.func @transform_2(%arg0: i32) -> (i32, i32) {
    %c0_i32 = arith.constant 0 : i32
    %c0_i32_0 = arith.constant 0 : i32
    %c0_i32_1 = arith.constant 0 : i32
    return %c0_i32, %c0_i32_0 : i32, i32
  }
  func.func @transform_3(%arg0: i32) -> (i32, i32) {
    %c0_i32 = arith.constant 0 : i32
    %c0_i32_0 = arith.constant 0 : i32
    return %arg0, %c0_i32 : i32, i32
  }
}

</mosaic_0001>

<bundles_post_ra>
// kernel: tpu_custom_call.1
= control target key start
LH: loop header
LB: loop body
LE: loop exit
PB: predicated region body
PF: predicated region fallthrough
CT: control target
= control target key end

     0   :  { %8 = vsyncpa [#allocation3], 0  ;;  %s325_s0 = inlined_call_operand.hbm [shape: f32[8,32], index: 0, kind: input, shape index: {}]   ;;  %s326_s1 = inlined_call_operand.hbm [shape: f32[32,128], index: 1, kind: input, shape index: {}]   ;;  %s327_s2 = inlined_call_operand.vmem [shape: f32[1,128], index: 2, kind: input, shape index: {}]   ;;  %s328_s3 = inlined_call_operand.hbm [shape: f32[8,128], index: 3, kind: output, shape index: {}]  }
   0x1   :  { %9 = vsyncpa [#allocation6], 0 }
   0x2   :  { %10 = vsyncpa [#allocation4], 0  ;;  %s251_s12 = smov [#allocation2]   ;;  %s252_s14 = smov [#allocation5]  }
   0x3   :  { %s17_s13 = sshll.u32 %s251_s12, 4  ;;  %s26_s15 = sshll.u32 %s252_s14, 4  ;;  %s18_s13 = int_to_ptr.vmem [resolvable:$true] %s17_s13  ;;  %s279_s15 = int_to_ptr.vmem [resolvable:$true] %s26_s15 }
   0x4   :  { %s179_s18 = scalar_lea.hbm %s325_s0, 128 }
   0x5   :  { %p180_p0 = scmp.ne.s32.totalorder %s325_s0, %s179_s18  ;;  %p183_p1 = scmp.lt.u32.totalorder %s179_s18, %s325_s0 }
   0x7   :  { %p185_p2 = pnand %p183_p1, %p180_p0 }
   0x9   :  { %188 = shalt.err (!%p185_p2)
}
   0xa   :  { %s189_s23 = scalar_lea.vmem %s18_s13, 128  ;;  %p194_p4 = scmp.lt.s32.totalorder %s18_s13, %s18_s13 }
   0xb   :  { %p190_p3 = scmp.ne.s32.totalorder %s18_s13, %s189_s23  ;;  %p195_p5 = scmp.lt.s32.totalorder %s189_s23, %s189_s23 }
   0xd   :  { %p196_p6 = por %p195_p5, %p194_p4 }
   0xf   :  { %p197_p7 = pnand %p196_p6, %p190_p3 }
  0x11   :  { %200 = shalt.err (!%p197_p7)
}
  0x12   :  { %20 = dma.hbm_to_vmem [thread:$0]  %s325_s0, 128, %s18_s13, [#allocation3]  }
  0x13   :  { %s201_s28 = scalar_lea.hbm %s326_s1, 512 }
  0x14   :  { %p202_p8 = scmp.ne.s32.totalorder %s326_s1, %s201_s28  ;;  %p205_p9 = scmp.lt.u32.totalorder %s201_s28, %s326_s1 }
  0x16   :  { %p207_p10 = pnand %p205_p9, %p202_p8 }
  0x18   :  { %210 = shalt.err (!%p207_p10)
}
  0x19   :  { %s211_s6 = scalar_lea.vmem %s279_s15, 512  ;;  %p216_p12 = scmp.lt.s32.totalorder %s279_s15, %s279_s15 }
  0x1a   :  { %p212_p11 = scmp.ne.s32.totalorder %s279_s15, %s211_s6  ;;  %p217_p13 = scmp.lt.s32.totalorder %s211_s6, %s211_s6 }
  0x1c   :  { %p218_p0 = por %p217_p13, %p216_p12 }
  0x1e   :  { %p219_p1 = pnand %p218_p0, %p212_p11 }
  0x20   :  { %222 = shalt.err (!%p219_p1)
}
  0x21   :  { %s253_s0 = smov 128   ;;  %s254_s7 = smov 8  }
  0x22   :  { %32 = dma.hbm_to_vmem [thread:$0]  %s326_s1, 512, %s279_s15, [#allocation6], %s253_s0, %s253_s0, %s254_s7  }
  0x23   :  { %245 = dma.done.wait [#allocation3], 128  }
  0x24   :  { %246 = vsyncadd [#allocation3], 4294967168 }
  0x25   :  { %247 = dma.done.wait [#allocation6], 512  }
  0x26   :  { %248 = vsyncadd [#allocation6], 4294966784  ;;  %v255_v0 = vmov 0.0|0.0   ;;  %vm256_vm0 = vmmov 0   ;;  %v257_v1 = vmov 0.0   ;;  %v45_v2 = vld [vmem:[#allocation5] sm:$0xff] }
  0x27   :  { %165 = vmatprep.subr.bf16.mxu0 %v255_v0  ;;  %162 = vmatprep.mubr.msk.f32.mxu0 %vm256_vm0, %v257_v1  ;;  %v46_v3 = vld [vmem:[#allocation5 + $0x8] sm:$0xff]  ;;  %v47_v4 = vld [vmem:[#allocation5 + $0x10] sm:$0xff]  ;;  %v48_v6 = vld [vmem:[#allocation5 + $0x18] sm:$0xff]  ;;  %vm56_vm2 = vcmask 261120   ;;  %s258_s11 = smov [#allocation7]  }
  0x28   :  { %v166_v5 = vpack.c.bf16 %v46_v3, %v45_v2  ;;  %v41_v7 = vld [vmem:[#allocation2] sm:$0xff]  ;;  %v169_v8 = vpack.c.bf16 %v48_v6, %v47_v4  ;;  %s137_s12 = sshll.u32 %s258_s11, 4  ;;  %s138_s12 = int_to_ptr.vmem [resolvable:$true] %s137_s12 }
  0x29   :  { %v43_v9 = vmul.f32 0.01, %v41_v7  ;;  %vm42_vm1 = vcmp.ge.f32.partialorder %v41_v7, 0.0  ;;  %v147_v11 = vld [vmem:[%s327_s2] ss:$0 sm:$0xff]  ;;  %s223_s13 = scalar_lea.vmem %s138_s12, 128  ;;  %p228_p3 = scmp.lt.s32.totalorder %s138_s12, %s138_s12 }
  0x2a   :  { %167 = vmatpush3.bf16.msra.mxu0 %v166_v5  ;;  %p224_p2 = scmp.ne.s32.totalorder %s138_s12, %s223_s13  ;;  %p229_p4 = scmp.lt.s32.totalorder %s223_s13, %s223_s13 }
  0x2b   :  { %168 = vmatprep.subr.bf16.mxu0 %v255_v0  ;;  %v44_v10 = vsel %vm42_vm1, %v41_v7, %v43_v9 }
  0x2c   :  { %p230_p5 = por %p229_p4, %p228_p3 }
  0x2e   :  { %170 = vmatpush3.bf16.msra.mxu0 %v169_v8  ;;  %p231_p6 = pnand %p230_p5, %p224_p2 }
  0x31   :  { %163 = vmatmul.mubr.msk.f32.vlgmr.msra.gmra.mrb[0].mxu0 %vm56_vm2, %v44_v10 }
 0x104   :  { %v126_v12 = vpop.f32.mrb[0].mxu0 }
 0x105   :  { %v127_v13 = vadd.f32 %v147_v11, %v126_v12  ;;  %v164_v14 = vpop.f32.mrb[1].mxu0 }
 0x107   :  { %130 = vst [vmem:[#allocation7] sm:$0xff] %v127_v13 }
 0x108   :  { %234 = shalt.err (!%p231_p6)
}
 0x109   :  { %s235_s16 = scalar_lea.hbm %s328_s3, 128 }
 0x10a   :  { %p236_p7 = scmp.ne.s32.totalorder %s328_s3, %s235_s16  ;;  %p239_p8 = scmp.lt.u32.totalorder %s235_s16, %s328_s3 }
 0x10c   :  { %p241_p9 = pnand %p239_p8, %p236_p7 }
 0x10e   :  { %244 = shalt.err (!%p241_p9)
}
 0x10f   :  { %140 = dma.vmem_to_hbm [thread:$0]  %s138_s12, 128, %s328_s3, [#allocation4]  }
 0x110   :  { %249 = dma.done.wait [#allocation4], 128  }
 0x111   :  { %250 = vsyncadd [#allocation4], 4294967168 }
 0x112   :  { %144 = vsyncpa [#allocation3], 1 }
 0x113   :  { %145 = vsyncpa [#allocation6], 1 }
 0x114   :  { %146 = vsyncpa [#allocation4], 1 }

</bundles_post_ra>
